<compile_context>
chip_gen: v7x
topology: tpu7x:2x2x1
jax: 0.10.0
libtpu: 0.0.40
codegen_flags: <defaults>
</compile_context>

<pallas_src>
import functools

import jax
import jax.numpy as jnp
from jax import lax
from jax.experimental import pallas as pl
from jax.experimental.pallas import tpu as pltpu

_EPS = 1e-12          # torch.nn.functional.normalize default eps
_EPS2 = _EPS * _EPS   # 1e-24, representable (normal) in f32


def _dot_regression_kernel(x_ref, y_ref, err_ref, *, n_rows, tile_rows):
    i = pl.program_id(0)

    x = x_ref[...].astype(jnp.float32)            # (TN, D)
    y = y_ref[...].astype(jnp.float32)            # (TN, D)

    # Row-wise second moments (three multiplies feeding three lane reductions).
    sxx = jnp.sum(x * x, axis=1, keepdims=True)   # (TN, 1)
    syy = jnp.sum(y * y, axis=1, keepdims=True)   # (TN, 1)
    sxy = jnp.sum(x * y, axis=1, keepdims=True)   # (TN, 1)

    # dot = <x,y> / (max(||x||, eps) * max(||y||, eps))
    inv = lax.rsqrt(jnp.maximum(sxx, _EPS2)) * lax.rsqrt(jnp.maximum(syy, _EPS2))
    dot = sxy * inv
    err = (dot - 1.0) ** 2                        # (TN, 1)

    # Mask rows past the true batch size (last, possibly padded, tile).
    row_ids = i * tile_rows + lax.broadcasted_iota(jnp.int32, (tile_rows, 1), 0)
    err_ref[...] = jnp.where(row_ids < n_rows, err, jnp.float32(0.0))


def _pick_tile_rows(n, d, itemsize, *, per_block_bytes=6 * 1024 * 1024,
                    max_rows=1024):
    """Largest 8-multiple row tile targeting ~6 MiB per input block."""
    rows = max(8, per_block_bytes // max(1, d * itemsize))
    rows = min(rows, max_rows)
    n_pad = pl.cdiv(n, 8) * 8
    rows = min(rows, n_pad)
    return max(8, (rows // 8) * 8)


def dot_regression_loss(outputs, targets, *, tile_rows=None,
                        vmem_limit_bytes=48 * 1024 * 1024):
    assert outputs.shape == targets.shape
    assert outputs.ndim == 2, "expected (batch, features)"
    n, d = outputs.shape
    itemsize = jnp.dtype(outputs.dtype).itemsize

    if tile_rows is None:
        tile_rows = _pick_tile_rows(n, d, itemsize)
    num_tiles = pl.cdiv(n, tile_rows)
    n_pad = num_tiles * tile_rows

    kernel = functools.partial(_dot_regression_kernel,
                               n_rows=n, tile_rows=tile_rows)

    cost = pl.CostEstimate(
        flops=6 * n * d,                     # 3 muls + 3 reduction adds / elem
        transcendentals=2 * n,               # two rsqrt per row
        bytes_accessed=2 * n * d * itemsize + 4 * n_pad,
    )

    # TODO(synk): for very small D (lane-sparse vregs) a wrapper-side fold of
    # the feature dim to a 128-dense layout would further improve VPU/DMA
    # efficiency; kept simple here since the kernel stays bandwidth-bound.
    per_row = pl.pallas_call(
        kernel,
        out_shape=jax.ShapeDtypeStruct((n_pad, 1), jnp.float32),
        grid_spec=pltpu.PrefetchScalarGridSpec(
            num_scalar_prefetch=0,
            grid=(num_tiles,),
            in_specs=[
                pl.BlockSpec((tile_rows, d), lambda i: (i, 0)),
                pl.BlockSpec((tile_rows, d), lambda i: (i, 0)),
            ],
            out_specs=pl.BlockSpec((tile_rows, 1), lambda i: (i, 0)),
        ),
        compiler_params=pltpu.CompilerParams(
            dimension_semantics=("parallel",),   # no cross-tile dependency
            vmem_limit_bytes=vmem_limit_bytes,
        ),
        cost_estimate=cost,
    )(outputs, targets)

    # Padded rows are exactly 0, so summing the full padded output is safe.
    return 0.5 * jnp.sum(per_row) / jnp.float32(n)


def _reference(outputs, targets):
    x = outputs.astype(jnp.float32)
    y = targets.astype(jnp.float32)
    xn = x / jnp.maximum(jnp.linalg.norm(x, axis=1, keepdims=True), _EPS)
    yn = y / jnp.maximum(jnp.linalg.norm(y, axis=1, keepdims=True), _EPS)
    dot = jnp.sum(xn * yn, axis=1)
    return 0.5 * jnp.mean((dot - 1.0) ** 2)


if __name__ == "__main__":
    key = jax.random.PRNGKey(0)
    k1, k2, k3, k4 = jax.random.split(key, 4)

    # Primary small case: batch=16, hidden=32.
    N, D = 16, 32
    outputs = jax.random.normal(k1, (N, D), dtype=jnp.float32)
    targets = jax.random.normal(k2, (N, D), dtype=jnp.float32)
    loss = jax.block_until_ready(dot_regression_loss(outputs, targets))
    ref = _reference(outputs, targets)
    assert jnp.allclose(loss, ref, atol=1e-5, rtol=1e-5), (loss, ref)

    # Non-divisible batch exercises the padded-tile mask path.
    N2 = 13
    outputs2 = jax.random.normal(k3, (N2, D), dtype=jnp.float32)
    targets2 = jax.random.normal(k4, (N2, D), dtype=jnp.float32)
    loss2 = jax.block_until_ready(dot_regression_loss(outputs2, targets2))
    ref2 = _reference(outputs2, targets2)
    assert jnp.allclose(loss2, ref2, atol=1e-5, rtol=1e-5), (loss2, ref2)

    print("KERNEL_OK")
</pallas_src>

<mosaic_0001>
module attributes {stable_mosaic.version = 11 : i64} {
  func.func @_dot_regression_kernel(%arg0: i32, %arg1: memref<16x32xf32, #tpu.memory_space<vmem>>, %arg2: memref<16x32xf32, #tpu.memory_space<vmem>>, %arg3: memref<16x1xf32, #tpu.memory_space<vmem>>) attributes {dimension_semantics = [#tpu.dimension_semantics<parallel>], iteration_bounds = array<i64: 1>, scalar_prefetch = 0 : i64, scratch_operands = 0 : i64, tpu.core_type = #tpu.core_type<tc>, window_params = [{transform_indices = @transform_0, window_bounds = array<i64: 16, 32>}, {transform_indices = @transform_1, window_bounds = array<i64: 16, 32>}, {transform_indices = @transform_2, window_bounds = array<i64: 16, 1>}]} {
    %c0 = arith.constant 0 : index
    %c0_0 = arith.constant 0 : index
    %0 = vector.load %arg1[%c0, %c0_0] : memref<16x32xf32, #tpu.memory_space<vmem>>, vector<16x32xf32>
    %c0_1 = arith.constant 0 : index
    %c0_2 = arith.constant 0 : index
    %1 = vector.load %arg2[%c0_1, %c0_2] : memref<16x32xf32, #tpu.memory_space<vmem>>, vector<16x32xf32>
    %2 = arith.mulf %0, %0 : vector<16x32xf32>
    %cst = arith.constant dense<0.000000e+00> : vector<16xf32>
    %3 = vector.multi_reduction <add>, %2, %cst [1] : vector<16x32xf32> to vector<16xf32>
    %4 = vector.shape_cast %3 : vector<16xf32> to vector<16x1xf32>
    %5 = arith.mulf %1, %1 : vector<16x32xf32>
    %cst_3 = arith.constant dense<0.000000e+00> : vector<16xf32>
    %6 = vector.multi_reduction <add>, %5, %cst_3 [1] : vector<16x32xf32> to vector<16xf32>
    %7 = vector.shape_cast %6 : vector<16xf32> to vector<16x1xf32>
    %8 = arith.mulf %0, %1 : vector<16x32xf32>
    %cst_4 = arith.constant dense<0.000000e+00> : vector<16xf32>
    %9 = vector.multi_reduction <add>, %8, %cst_4 [1] : vector<16x32xf32> to vector<16xf32>
    %10 = vector.shape_cast %9 : vector<16xf32> to vector<16x1xf32>
    %cst_5 = arith.constant 1.000000e-24 : f32
    %11 = vector.broadcast %cst_5 : f32 to vector<16x1xf32>
    %12 = arith.maximumf %4, %11 : vector<16x1xf32>
    %13 = math.rsqrt %12 : vector<16x1xf32>
    %cst_6 = arith.constant 1.000000e-24 : f32
    %14 = vector.broadcast %cst_6 : f32 to vector<16x1xf32>
    %15 = arith.maximumf %7, %14 : vector<16x1xf32>
    %16 = math.rsqrt %15 : vector<16x1xf32>
    %17 = arith.mulf %13, %16 : vector<16x1xf32>
    %18 = arith.mulf %10, %17 : vector<16x1xf32>
    %cst_7 = arith.constant 1.000000e+00 : f32
    %19 = vector.broadcast %cst_7 : f32 to vector<16x1xf32>
    %20 = arith.subf %18, %19 : vector<16x1xf32>
    %21 = arith.mulf %20, %20 : vector<16x1xf32>
    %c16_i32 = arith.constant 16 : i32
    %22 = arith.muli %arg0, %c16_i32 : i32
    %23 = tpu.iota {dimensions = array<i32: 0>} : vector<16x1xi32>
    %24 = vector.broadcast %22 : i32 to vector<16x1xi32>
    %25 = arith.addi %24, %23 : vector<16x1xi32>
    %c16_i32_8 = arith.constant 16 : i32
    %26 = vector.broadcast %c16_i32_8 : i32 to vector<16x1xi32>
    %27 = arith.cmpi slt, %25, %26 : vector<16x1xi32>
    %cst_9 = arith.constant 0.000000e+00 : f32
    %28 = vector.broadcast %cst_9 : f32 to vector<16x1xf32>
    %29 = arith.select %27, %21, %28 : vector<16x1xi1>, vector<16x1xf32>
    %c0_10 = arith.constant 0 : index
    %c0_11 = arith.constant 0 : index
    %30 = vector.load %arg3[%c0_10, %c0_11] : memref<16x1xf32, #tpu.memory_space<vmem>>, vector<16x1xf32>
    tpu.vector_store %arg3[%c0_10, %c0_11], %29 {strides = array<i32>} : memref<16x1xf32, #tpu.memory_space<vmem>>, vector<16x1xf32>,
    return
  }
  func.func @transform_0(%arg0: i32) -> (i32, i32) {
    %c0_i32 = arith.constant 0 : i32
    %c0_i32_0 = arith.constant 0 : i32
    return %arg0, %c0_i32 : i32, i32
  }
  func.func @transform_1(%arg0: i32) -> (i32, i32) {
    %c0_i32 = arith.constant 0 : i32
    %c0_i32_0 = arith.constant 0 : i32
    return %arg0, %c0_i32 : i32, i32
  }
  func.func @transform_2(%arg0: i32) -> (i32, i32) {
    %c0_i32 = arith.constant 0 : i32
    %c0_i32_0 = arith.constant 0 : i32
    return %arg0, %c0_i32 : i32, i32
  }
}

</mosaic_0001>

<bundles_post_ra>
// kernel: tpu_custom_call.1
= control target key start
LH: loop header
LB: loop body
LE: loop exit
PB: predicated region body
PF: predicated region fallthrough
CT: control target
= control target key end

     0   :  { %7 = vsyncpa [#allocation3], 0  ;;  %s221_s0 = inlined_call_operand.hbm [shape: f32[16,32], index: 0, kind: input, shape index: {}]   ;;  %s222_s1 = inlined_call_operand.hbm [shape: f32[16,32], index: 1, kind: input, shape index: {}]   ;;  %s223_s2 = inlined_call_operand.vmem [shape: f32[16,1], index: 2, kind: output, shape index: {}]  }
   0x1   :  { %8 = vsyncpa [#allocation5], 0  ;;  %s166_s9 = smov [#allocation2]   ;;  %s118_s13 = scalar_lea.hbm %s221_s0, 256 }
   0x2   :  { %s14_s10 = sshll.u32 %s166_s9, 4  ;;  %p119_p0 = scmp.ne.s32.totalorder %s221_s0, %s118_s13  ;;  %s15_s10 = int_to_ptr.vmem [resolvable:$true] %s14_s10 }
   0x3   :  { %p122_p1 = scmp.lt.u32.totalorder %s118_s13, %s221_s0 }
   0x5   :  { %p124_p2 = pnand %p122_p1, %p119_p0 }
   0x7   :  { %127 = shalt.err (!%p124_p2)
}
   0x8   :  { %s128_s18 = scalar_lea.vmem %s15_s10, 256  ;;  %p133_p4 = scmp.lt.s32.totalorder %s15_s10, %s15_s10 }
   0x9   :  { %p129_p3 = scmp.ne.s32.totalorder %s15_s10, %s128_s18  ;;  %p134_p5 = scmp.lt.s32.totalorder %s128_s18, %s128_s18 }
   0xb   :  { %p135_p6 = por %p134_p5, %p133_p4 }
   0xd   :  { %p136_p7 = pnand %p135_p6, %p129_p3 }
   0xf   :  { %139 = shalt.err (!%p136_p7)
}
  0x10   :  { %s167_s19 = smov 128   ;;  %s168_s20 = smov 8  }
  0x11   :  { %20 = dma.hbm_to_vmem [thread:$0]  %s221_s0, 256, %s15_s10, [#allocation3], %s167_s19, %s167_s19, %s168_s20  }
  0x12   :  { %s169_s23 = smov [#allocation4]   ;;  %s140_s27 = scalar_lea.hbm %s222_s1, 256 }
  0x13   :  { %s26_s24 = sshll.u32 %s169_s23, 4  ;;  %p141_p8 = scmp.ne.s32.totalorder %s222_s1, %s140_s27  ;;  %s27_s24 = int_to_ptr.vmem [resolvable:$true] %s26_s24 }
  0x14   :  { %p144_p9 = scmp.lt.u32.totalorder %s140_s27, %s222_s1 }
  0x16   :  { %p146_p10 = pnand %p144_p9, %p141_p8 }
  0x18   :  { %149 = shalt.err (!%p146_p10)
}
  0x19   :  { %s150_s4 = scalar_lea.vmem %s27_s24, 256  ;;  %p155_p12 = scmp.lt.s32.totalorder %s27_s24, %s27_s24 }
  0x1a   :  { %p151_p11 = scmp.ne.s32.totalorder %s27_s24, %s150_s4  ;;  %p156_p13 = scmp.lt.s32.totalorder %s150_s4, %s150_s4 }
  0x1c   :  { %p157_p0 = por %p156_p13, %p155_p12 }
  0x1e   :  { %p158_p1 = pnand %p157_p0, %p151_p11 }
  0x20   :  { %161 = shalt.err (!%p158_p1)
}
  0x21   :  { %32 = dma.hbm_to_vmem [thread:$0]  %s222_s1, 256, %s27_s24, [#allocation5], %s167_s19, %s167_s19, %s168_s20  }
  0x22   :  { %162 = dma.done.wait [#allocation3], 256  }
  0x23   :  { %163 = vsyncadd [#allocation3], 4294967040 }
  0x24   :  { %164 = dma.done.wait [#allocation5], 256  }
  0x25   :  { %165 = vsyncadd [#allocation5], 4294967040  ;;  %v41_v0 = vld [vmem:[#allocation4] sm:$0xff]  ;;  %vm45_vm0 = vcmask 261120   ;;  %v39_v1 = vld [vmem:[#allocation2] sm:$0xff]  ;;  %vm95_vm1 = vcmask 7168  }
  0x26   :  { %v42_v2 = vld [vmem:[#allocation4 + $0x8] sm:$0xff]  ;;  %v52_v3 = vmul.f32 %v41_v0, %v41_v0  ;;  %v43_v4 = vmul.f32 %v39_v1, %v39_v1  ;;  %v40_v6 = vld [vmem:[#allocation2 + $0x8] sm:$0xff]  ;;  %v60_v12 = vmul.f32 %v41_v0, %v39_v1 }
  0x27   :  { %v53_v5 = vmul.f32 %v42_v2, %v42_v2  ;;  %v44_v7 = vmul.f32 %v40_v6, %v40_v6  ;;  %v61_v13 = vmul.f32 %v42_v2, %v40_v6 }
  0x28   :  { %v54_v8 = vsel %vm45_vm0, %v52_v3, 0.0  ;;  %v46_v9 = vsel %vm45_vm0, %v43_v4, 0.0  ;;  %v62_v14 = vsel %vm45_vm0, %v60_v12, 0.0 }
  0x29   :  { %55 = vadd.xlane.f32.xlu1 %v54_v8  ;;  %47 = vadd.xlane.f32.xlu0 %v46_v9  ;;  %v57_v10 = vsel %vm45_vm0, %v53_v5, 0.0  ;;  %v49_v11 = vsel %vm45_vm0, %v44_v7, 0.0  ;;  %v65_v15 = vsel %vm45_vm0, %v61_v13, 0.0 }
  0x2d   :  { %58 = vadd.xlane.f32.xlu1 %v57_v10  ;;  %50 = vadd.xlane.f32.xlu0 %v49_v11 }
  0x31   :  { %63 = vadd.xlane.f32.xlu0 %v62_v14  ;;  %66 = vadd.xlane.f32.xlu1 %v65_v15 }
  0xb6   :  { %v56_v16 = vpop.xlane.xlu1 %55  ;;  %v48_v17 = vpop.xlane.xlu0 %47 }
  0xb7   :  { %v72_v18 = vmax.f32 %v56_v16, 1e-24  ;;  %v68_v19 = vmax.f32 %v48_v17, 1e-24 }
  0xb9   :  { %110 = vrsqrt.f32 %v72_v18 }
  0xba   :  { %112 = vrsqrt.f32 %v68_v19  ;;  %v59_v20 = vpop.xlane.xlu1 %58  ;;  %v51_v21 = vpop.xlane.xlu0 %50 }
  0xbb   :  { %v73_v22 = vmax.f32 %v59_v20, 1e-24  ;;  %v69_v23 = vmax.f32 %v51_v21, 1e-24 }
  0xbd   :  { %114 = vrsqrt.f32 %v73_v22 }
  0xbe   :  { %116 = vrsqrt.f32 %v69_v23  ;;  %v64_v26 = vpop.xlane.xlu0 %63  ;;  %v67_v31 = vpop.xlane.xlu1 %66 }
  0xc3   :  { %v111_v24 = vpop.eup %110 }
  0xc4   :  { %v113_v25 = vpop.eup %112 }
  0xc5   :  { %v76_v27 = vmul.f32 %v113_v25, %v111_v24 }
  0xc7   :  { %v115_v28 = vpop.eup %114  ;;  %v78_v29 = vmul.f32 %v76_v27, %v64_v26 }
  0xc8   :  { %v117_v30 = vpop.eup %116 }
  0xc9   :  { %v104_v32 = vadd.f32 -1.0, %v78_v29  ;;  %v77_v33 = vmul.f32 %v117_v30, %v115_v28 }
  0xcb   :  { %v82_v34 = vmul.f32 %v104_v32, %v104_v32  ;;  %v79_v35 = vmul.f32 %v77_v33, %v67_v31 }
  0xcd   :  { %96 = vst.msk [vmem:[%s223_s2] sm:$0xff] %vm95_vm1, %v82_v34  ;;  %v105_v36 = vadd.f32 -1.0, %v79_v35 }
  0xcf   :  { %v83_v37 = vmul.f32 %v105_v36, %v105_v36 }
  0xd1   :  { %97 = vst.msk [vmem:[%s223_s2 + $0x8] sm:$0xff] %vm95_vm1, %v83_v37 }
  0xd2   :  { %102 = vsyncpa [#allocation3], 1 }
  0xd3   :  { %103 = vsyncpa [#allocation5], 1 }

</bundles_post_ra>
